<compile_context>
chip_gen: v6e
topology: v6e:2x2x1
jax: 0.10.0
libtpu: 0.0.40
codegen_flags: <defaults>
</compile_context>

<pallas_src>
import functools
import math

import jax
import jax.numpy as jnp
from jax.experimental import pallas as pl
from jax.experimental.pallas import tpu as pltpu


def _pick_tile(total, candidates):
    for c in candidates:
        if c <= total and total % c == 0:
            return c
    return total


# ---------------------------------------------------------------------------
# Tiled linear:  y = x @ w + b      x: [M, K]  w: [K, N]  b: [N]  ->  [M, N]
# ---------------------------------------------------------------------------
def _linear_kernel(x_ref, w_ref, b_ref, o_ref, acc_ref):
    k = pl.program_id(2)

    @pl.when(k == 0)
    def _():
        acc_ref[...] = jnp.zeros_like(acc_ref)

    acc_ref[...] += jnp.dot(x_ref[...], w_ref[...],
                            preferred_element_type=jnp.float32)

    @pl.when(k == pl.num_programs(2) - 1)
    def _():
        o_ref[...] = (acc_ref[...]
                      + b_ref[...].astype(jnp.float32)).astype(o_ref.dtype)


def pallas_linear(x, w, b, *, out_dtype=None):
    M, K = x.shape
    K2, N = w.shape
    assert K == K2 and b.shape == (N,)
    out_dtype = out_dtype or x.dtype

    tm = _pick_tile(M, (512, 256, 128, 64, 32, 16, 8))
    tn = _pick_tile(N, (512, 384, 256, 128))          # lane-dense N tiles
    tk = _pick_tile(K, (1024, 512, 256, 128))

    grid = (M // tm, N // tn, K // tk)
    return pl.pallas_call(
        _linear_kernel,
        out_shape=jax.ShapeDtypeStruct((M, N), out_dtype),
        grid_spec=pltpu.PrefetchScalarGridSpec(
            num_scalar_prefetch=0,
            grid=grid,
            in_specs=[
                pl.BlockSpec((tm, tk), lambda i, j, k: (i, k)),
                pl.BlockSpec((tk, tn), lambda i, j, k: (k, j)),
                pl.BlockSpec((1, tn), lambda i, j, k: (0, j)),
            ],
            out_specs=pl.BlockSpec((tm, tn), lambda i, j, k: (i, j)),
            scratch_shapes=[pltpu.VMEM((tm, tn), jnp.float32)],
        ),
        compiler_params=pltpu.CompilerParams(
            dimension_semantics=("parallel", "parallel", "arbitrary")),
    )(x, w, b.reshape(1, N))


# ---------------------------------------------------------------------------
# Flash attention (online softmax), q/k/v: [B*H, L, Dh]
# ---------------------------------------------------------------------------
def _flash_kernel(q_ref, k_ref, v_ref, o_ref, m_sc, l_sc, acc_sc, *, scale):
    ki = pl.program_id(2)

    @pl.when(ki == 0)
    def _():
        m_sc[...] = jnp.full_like(m_sc, -jnp.inf)
        l_sc[...] = jnp.zeros_like(l_sc)
        acc_sc[...] = jnp.zeros_like(acc_sc)

    # Fold the softmax scale into q (bq x Dh muls instead of bq x bk).
    q = q_ref[...] * scale
    # s = (q * scale) @ k^T   (f32 accumulation on the MXU)
    s = jax.lax.dot_general(
        q, k_ref[...], (((1,), (1,)), ((), ())),
        preferred_element_type=jnp.float32)                    # [bq, bk]

    m_prev = m_sc[...]
    m_new = jnp.maximum(m_prev, s.max(axis=-1, keepdims=True))
    alpha = jnp.exp(m_prev - m_new)
    p = jnp.exp(s - m_new)
    l_sc[...] = alpha * l_sc[...] + p.sum(axis=-1, keepdims=True)
    acc_sc[...] = alpha * acc_sc[...] + jnp.dot(
        p.astype(v_ref.dtype), v_ref[...], preferred_element_type=jnp.float32)
    m_sc[...] = m_new

    @pl.when(ki == pl.num_programs(2) - 1)
    def _():
        o_ref[...] = (acc_sc[...] / l_sc[...]).astype(o_ref.dtype)


def pallas_attention(q, k, v, *, scale):
    BH, L, Dh = q.shape
    bq = _pick_tile(L, (512, 256, 128, 64, 32, 16, 8))
    bk = _pick_tile(L, (512, 256, 128, 64, 32, 16, 8))
    grid = (BH, L // bq, L // bk)

    kernel = functools.partial(_flash_kernel, scale=scale)
    return pl.pallas_call(
        kernel,
        out_shape=jax.ShapeDtypeStruct((BH, L, Dh), q.dtype),
        grid_spec=pltpu.PrefetchScalarGridSpec(
            num_scalar_prefetch=0,
            grid=grid,
            in_specs=[
                pl.BlockSpec((None, bq, Dh), lambda b, qi, ki: (b, qi, 0)),
                pl.BlockSpec((None, bk, Dh), lambda b, qi, ki: (b, ki, 0)),
                pl.BlockSpec((None, bk, Dh), lambda b, qi, ki: (b, ki, 0)),
            ],
            out_specs=pl.BlockSpec((None, bq, Dh), lambda b, qi, ki: (b, qi, 0)),
            scratch_shapes=[
                pltpu.VMEM((bq, 1), jnp.float32),    # running max m
                pltpu.VMEM((bq, 1), jnp.float32),    # running denom l
                pltpu.VMEM((bq, Dh), jnp.float32),   # output accumulator
            ]),
        compiler_params=pltpu.CompilerParams(
            dimension_semantics=("parallel", "parallel", "arbitrary")),
    )(q, k, v)


# ---------------------------------------------------------------------------
# JointAttention forward
# ---------------------------------------------------------------------------
def joint_attention_forward(hidden_states_a, hidden_states_b, params,
                            num_heads, head_dim, only_out_a=False):
    B, La, dim_a = hidden_states_a.shape
    _, Lb, dim_b = hidden_states_b.shape
    assert dim_a == num_heads * head_dim and dim_b == num_heads * head_dim

    # --- QKV projections (Pallas tiled matmul) ---
    # PyTorch Linear weight is [out, in]; pass [in, out] to the kernel.
    qkv_a = pallas_linear(hidden_states_a.reshape(B * La, dim_a),
                          params["a_to_qkv_w"].T, params["a_to_qkv_b"])
    qkv_b = pallas_linear(hidden_states_b.reshape(B * Lb, dim_b),
                          params["b_to_qkv_w"].T, params["b_to_qkv_b"])
    L = La + Lb
    qkv = jnp.concatenate([qkv_a.reshape(B, La, 3 * dim_a),
                           qkv_b.reshape(B, Lb, 3 * dim_b)], axis=1)   # [B, L, 3*dim]

    # view(B, L, 3*H, Dh).transpose(1, 2); chunk(3, dim=1)
    qkv = qkv.reshape(B, L, 3, num_heads, head_dim)
    q = jnp.transpose(qkv[:, :, 0], (0, 2, 1, 3)).reshape(B * num_heads, L, head_dim)
    k = jnp.transpose(qkv[:, :, 1], (0, 2, 1, 3)).reshape(B * num_heads, L, head_dim)
    v = jnp.transpose(qkv[:, :, 2], (0, 2, 1, 3)).reshape(B * num_heads, L, head_dim)

    # --- joint scaled-dot-product attention (Pallas flash attention) ---
    o = pallas_attention(q, k, v, scale=1.0 / math.sqrt(head_dim))     # [B*H, L, Dh]
    o = o.reshape(B, num_heads, L, head_dim)
    o = jnp.transpose(o, (0, 2, 1, 3)).reshape(B, L, num_heads * head_dim)

    # --- output projections ---
    out_a = pallas_linear(o[:, :La].reshape(B * La, dim_a),
                          params["a_to_out_w"].T,
                          params["a_to_out_b"]).reshape(B, La, dim_a)
    if only_out_a:
        return out_a
    out_b = pallas_linear(o[:, La:].reshape(B * Lb, dim_b),
                          params["b_to_out_w"].T,
                          params["b_to_out_b"]).reshape(B, Lb, dim_b)
    return out_a, out_b


# ---------------------------------------------------------------------------
# Pure-JAX reference mirroring the PyTorch module
# ---------------------------------------------------------------------------
def reference_forward(hidden_states_a, hidden_states_b, params,
                      num_heads, head_dim, only_out_a=False):
    B, La, dim_a = hidden_states_a.shape
    Lb = hidden_states_b.shape[1]
    qkv_a = hidden_states_a @ params["a_to_qkv_w"].T + params["a_to_qkv_b"]
    qkv_b = hidden_states_b @ params["b_to_qkv_w"].T + params["b_to_qkv_b"]
    qkv = jnp.concatenate([qkv_a, qkv_b], axis=1)
    L = La + Lb
    qkv = qkv.reshape(B, L, 3, num_heads, head_dim)
    q = jnp.transpose(qkv[:, :, 0], (0, 2, 1, 3))
    k = jnp.transpose(qkv[:, :, 1], (0, 2, 1, 3))
    v = jnp.transpose(qkv[:, :, 2], (0, 2, 1, 3))
    s = jnp.einsum("bhqd,bhkd->bhqk", q, k) / math.sqrt(head_dim)
    p = jax.nn.softmax(s.astype(jnp.float32), axis=-1).astype(q.dtype)
    o = jnp.einsum("bhqk,bhkd->bhqd", p, v)
    o = jnp.transpose(o, (0, 2, 1, 3)).reshape(B, L, num_heads * head_dim)
    out_a = o[:, :La] @ params["a_to_out_w"].T + params["a_to_out_b"]
    if only_out_a:
        return out_a
    out_b = o[:, La:] @ params["b_to_out_w"].T + params["b_to_out_b"]
    return out_a, out_b


if __name__ == "__main__":
    # Small but tile-friendly shapes consistent with the module semantics.
    B = 2
    num_heads = 2
    head_dim = 64
    dim = num_heads * head_dim          # dim_a == dim_b == 128
    La, Lb = 128, 64

    key = jax.random.PRNGKey(0)
    keys = jax.random.split(key, 10)
    a_in = jax.random.normal(keys[0], (B, La, dim), dtype=jnp.float32)
    b_in = jax.random.normal(keys[1], (B, Lb, dim), dtype=jnp.float32)
    params = {
        "a_to_qkv_w": jax.random.normal(keys[2], (3 * dim, dim), jnp.float32) * 0.02,
        "a_to_qkv_b": jax.random.normal(keys[3], (3 * dim,), jnp.float32) * 0.02,
        "b_to_qkv_w": jax.random.normal(keys[4], (3 * dim, dim), jnp.float32) * 0.02,
        "b_to_qkv_b": jax.random.normal(keys[5], (3 * dim,), jnp.float32) * 0.02,
        "a_to_out_w": jax.random.normal(keys[6], (dim, dim), jnp.float32) * 0.02,
        "a_to_out_b": jax.random.normal(keys[7], (dim,), jnp.float32) * 0.02,
        "b_to_out_w": jax.random.normal(keys[8], (dim, dim), jnp.float32) * 0.02,
        "b_to_out_b": jax.random.normal(keys[9], (dim,), jnp.float32) * 0.02,
    }

    out_a, out_b = joint_attention_forward(a_in, b_in, params, num_heads, head_dim)
    out_a, out_b = jax.block_until_ready((out_a, out_b))

    ref_a, ref_b = reference_forward(a_in, b_in, params, num_heads, head_dim)
    assert out_a.shape == (B, La, dim) and out_b.shape == (B, Lb, dim)
    assert jnp.allclose(out_a, ref_a, atol=2e-4, rtol=2e-4), "mismatch in out_a"
    assert jnp.allclose(out_b, ref_b, atol=2e-4, rtol=2e-4), "mismatch in out_b"

    print("KERNEL_OK")
</pallas_src>

<mosaic_0001>
module attributes {stable_mosaic.version = 11 : i64} {
  func.func @_linear_kernel(%arg0: i32, %arg1: i32, %arg2: i32, %arg3: memref<256x128xf32, #tpu.memory_space<vmem>>, %arg4: memref<128x384xf32, #tpu.memory_space<vmem>>, %arg5: memref<1x384xf32, #tpu.memory_space<vmem>>, %arg6: memref<256x384xf32, #tpu.memory_space<vmem>>, %arg7: memref<256x384xf32, #tpu.memory_space<vmem>>) attributes {dimension_semantics = [#tpu.dimension_semantics<parallel>, #tpu.dimension_semantics<parallel>, #tpu.dimension_semantics<arbitrary>], iteration_bounds = array<i64: 1, 1, 1>, scalar_prefetch = 0 : i64, scratch_operands = 1 : i64, tpu.core_type = #tpu.core_type<tc>, window_params = [{transform_indices = @transform_0, window_bounds = array<i64: 256, 128>}, {transform_indices = @transform_1, window_bounds = array<i64: 128, 384>}, {transform_indices = @transform_2, window_bounds = array<i64: 1, 384>}, {transform_indices = @transform_3, window_bounds = array<i64: 256, 384>}]} {
    %c0_i32 = arith.constant 0 : i32
    %0 = arith.cmpi eq, %arg2, %c0_i32 : i32
    %1 = arith.extui %0 : i1 to i32
    %c0_i32_0 = arith.constant 0 : i32
    %2 = arith.cmpi ne, %1, %c0_i32_0 : i32
    scf.if %2 {
      %cst_10 = arith.constant 0.000000e+00 : f32
      %12 = vector.broadcast %cst_10 : f32 to vector<256x384xf32>
      %c0_11 = arith.constant 0 : index
      %c0_12 = arith.constant 0 : index
      %13 = vector.load %arg7[%c0_11, %c0_12] : memref<256x384xf32, #tpu.memory_space<vmem>>, vector<256x384xf32>
      tpu.vector_store %arg7[%c0_11, %c0_12], %12 {strides = array<i32>} : memref<256x384xf32, #tpu.memory_space<vmem>>, vector<256x384xf32>,
    } else {
    }
    %c0 = arith.constant 0 : index
    %c0_1 = arith.constant 0 : index
    %3 = vector.load %arg7[%c0, %c0_1] : memref<256x384xf32, #tpu.memory_space<vmem>>, vector<256x384xf32>
    %c0_2 = arith.constant 0 : index
    %c0_3 = arith.constant 0 : index
    %4 = vector.load %arg3[%c0_2, %c0_3] : memref<256x128xf32, #tpu.memory_space<vmem>>, vector<256x128xf32>
    %c0_4 = arith.constant 0 : index
    %c0_5 = arith.constant 0 : index
    %5 = vector.load %arg4[%c0_4, %c0_5] : memref<128x384xf32, #tpu.memory_space<vmem>>, vector<128x384xf32>
    %cst = arith.constant dense<0.000000e+00> : vector<256x384xf32>
    %6 = tpu.matmul %4, %5, %cst {dimension_numbers = #tpu.dot_dimension_numbers<[1], [0], [0], [1], [0, 0, 1, 1], [], []>} : vector<256x128xf32>, vector<128x384xf32>, vector<256x384xf32> -> vector<256x384xf32>
    %7 = arith.addf %3, %6 : vector<256x384xf32>
    %c0_6 = arith.constant 0 : index
    %c0_7 = arith.constant 0 : index
    %8 = vector.load %arg7[%c0_6, %c0_7] : memref<256x384xf32, #tpu.memory_space<vmem>>, vector<256x384xf32>
    tpu.vector_store %arg7[%c0_6, %c0_7], %7 {strides = array<i32>} : memref<256x384xf32, #tpu.memory_space<vmem>>, vector<256x384xf32>,
    %c0_i32_8 = arith.constant 0 : i32
    %9 = arith.cmpi eq, %arg2, %c0_i32_8 : i32
    %10 = arith.extui %9 : i1 to i32
    %c0_i32_9 = arith.constant 0 : i32
    %11 = arith.cmpi ne, %10, %c0_i32_9 : i32
    scf.if %11 {
      %c0_10 = arith.constant 0 : index
      %c0_11 = arith.constant 0 : index
      %12 = vector.load %arg7[%c0_10, %c0_11] : memref<256x384xf32, #tpu.memory_space<vmem>>, vector<256x384xf32>
      %c0_12 = arith.constant 0 : index
      %c0_13 = arith.constant 0 : index
      %13 = vector.load %arg5[%c0_12, %c0_13] : memref<1x384xf32, #tpu.memory_space<vmem>>, vector<1x384xf32>
      %14 = vector.broadcast %13 : vector<1x384xf32> to vector<256x384xf32>
      %15 = arith.addf %12, %14 : vector<256x384xf32>
      %c0_14 = arith.constant 0 : index
      %c0_15 = arith.constant 0 : index
      %16 = vector.load %arg6[%c0_14, %c0_15] : memref<256x384xf32, #tpu.memory_space<vmem>>, vector<256x384xf32>
      tpu.vector_store %arg6[%c0_14, %c0_15], %15 {strides = array<i32>} : memref<256x384xf32, #tpu.memory_space<vmem>>, vector<256x384xf32>,
    } else {
    }
    return
  }
  func.func @transform_0(%arg0: i32, %arg1: i32, %arg2: i32) -> (i32, i32) {
    %c0_i32 = arith.constant 0 : i32
    return %arg0, %arg2 : i32, i32
  }
  func.func @transform_1(%arg0: i32, %arg1: i32, %arg2: i32) -> (i32, i32) {
    %c0_i32 = arith.constant 0 : i32
    return %arg2, %arg1 : i32, i32
  }
  func.func @transform_2(%arg0: i32, %arg1: i32, %arg2: i32) -> (i32, i32) {
    %c0_i32 = arith.constant 0 : i32
    %c0_i32_0 = arith.constant 0 : i32
    return %c0_i32, %arg1 : i32, i32
  }
  func.func @transform_3(%arg0: i32, %arg1: i32, %arg2: i32) -> (i32, i32) {
    %c0_i32 = arith.constant 0 : i32
    return %arg0, %arg1 : i32, i32
  }
}

</mosaic_0001>

<bundles_post_ra>
// kernel: tpu_custom_call.1
= control target key start
LH: loop header
LB: loop body
LE: loop exit
PB: predicated region body
PF: predicated region fallthrough
CT: control target
= control target key end

     0   :  { %8 = vsyncpa [#allocation4], 0  ;;  %s1791_s0 = inlined_call_operand.hbm [shape: f32[256,128], index: 0, kind: input, shape index: {}]   ;;  %s1792_s1 = inlined_call_operand.hbm [shape: f32[128,384], index: 1, kind: input, shape index: {}]   ;;  %s1793_s2 = inlined_call_operand.vmem [shape: f32[1,384], index: 2, kind: input, shape index: {}]   ;;  %s1794_s3 = inlined_call_operand.hbm [shape: f32[256,384], index: 3, kind: output, shape index: {}]  }
   0x1   :  { %9 = vsyncpa [#allocation7], 0 }
   0x2   :  { %10 = vsyncpa [#allocation5], 0  ;;  %s1553_s12 = smov [#allocation3]  }
   0x3   :  { %s16_s13 = sshll.u32 %s1553_s12, 4  ;;  %s17_s13 = int_to_ptr.vmem [resolvable:$true] %s16_s13 }
   0x4   :  { %s1495_s14 = scalar_lea.vmem %s17_s13, 4096  ;;  %p1500_p1 = scmp.lt.s32.totalorder %s17_s13, %s17_s13 }
   0x5   :  { %p1496_p0 = scmp.ne.s32.totalorder %s17_s13, %s1495_s14  ;;  %p1501_p2 = scmp.lt.s32.totalorder %s1495_s14, %s1495_s14 }
   0x7   :  { %p1502_p3 = por %p1501_p2, %p1500_p1 }
   0x9   :  { %p1503_p4 = pnand %p1502_p3, %p1496_p0 }
   0xb   :  { %1506 = shalt.err (!%p1503_p4)
}
   0xc   :  { %s1554_s15 = smov 128   ;;  %s1555_s16 = smov 8  }
   0xd   :  { %22 = dma.hbm_to_vmem [thread:$0]  %s1791_s0, 4096, %s17_s13, [#allocation4], %s1554_s15, %s1554_s15, %s1555_s16  }
   0xe   :  { %s1556_s19 = smov [#allocation6]  }
   0xf   :  { %s28_s20 = sshll.u32 %s1556_s19, 4  ;;  %s29_s20 = int_to_ptr.vmem [resolvable:$true] %s28_s20 }
  0x10   :  { %s1515_s21 = scalar_lea.vmem %s29_s20, 6144  ;;  %p1520_p6 = scmp.lt.s32.totalorder %s29_s20, %s29_s20 }
  0x11   :  { %p1516_p5 = scmp.ne.s32.totalorder %s29_s20, %s1515_s21  ;;  %p1521_p7 = scmp.lt.s32.totalorder %s1515_s21, %s1515_s21 }
  0x13   :  { %p1522_p8 = por %p1521_p7, %p1520_p6 }
  0x15   :  { %p1523_p9 = pnand %p1522_p8, %p1516_p5 }
  0x17   :  { %1526 = shalt.err (!%p1523_p9)
}
  0x18   :  { %s1557_s22 = smov 384   ;;  %s1558_s23 = smov 24  }
  0x19   :  { %34 = dma.hbm_to_vmem [thread:$0]  %s1792_s1, 6144, %s29_s20, [#allocation7], %s1557_s22, %s1557_s22, %s1558_s23  }
  0x1a   :  { %1547 = dma.done.wait [#allocation4], 4096  }
  0x1b   :  { %1548 = vsyncadd [#allocation4], 4294963200 }
  0x1c   :  { %1549 = dma.done.wait [#allocation7], 6144  }
  0x1d   :  { %1550 = vsyncadd [#allocation7], 4294961152  ;;  %v1559_v0 = vmov 0.0   ;;  %v317_v1 = vld [vmem:[#allocation6 + $0x170] sm:$0xff]  ;;  %v316_v2 = vld [vmem:[#allocation6 + $0x168] sm:$0xff] }
  0x1e   :  { %383 = vmatprep.mubr.f32.mxu0 %v1559_v0  ;;  %527 = vmatprep.mubr.f32.mxu1 %v1559_v0  ;;  %v314_v3 = vld [vmem:[#allocation6 + $0x158] sm:$0xff]  ;;  %v313_v4 = vld [vmem:[#allocation6 + $0x150] sm:$0xff]  ;;  %v311_v5 = vld [vmem:[#allocation6 + $0x140] sm:$0xff] }
  0x1f   :  { %319 = vmatprep.subr.mxu0 %v317_v1  ;;  %1447 = vmatprep.subr.mxu1 %v317_v1  ;;  %v310_v6 = vld [vmem:[#allocation6 + $0x138] sm:$0xff]  ;;  %v308_v7 = vld [vmem:[#allocation6 + $0x128] sm:$0xff]  ;;  %v307_v8 = vld [vmem:[#allocation6 + $0x120] sm:$0xff] }
  0x20   :  { %320 = vmatpush1.msra.mxu0 %v316_v2  ;;  %1463 = vmatpush1.msra.mxu1 %v316_v2  ;;  %v305_v9 = vld [vmem:[#allocation6 + $0x110] sm:$0xff]  ;;  %v304_v10 = vld [vmem:[#allocation6 + $0x108] sm:$0xff]  ;;  %v302_v11 = vld [vmem:[#allocation6 + $0xf8] sm:$0xff] }
  0x21   :  { %321 = vmatprep.subr.mxu0 %v314_v3  ;;  %1448 = vmatprep.subr.mxu1 %v314_v3  ;;  %v301_v12 = vld [vmem:[#allocation6 + $0xf0] sm:$0xff]  ;;  %v299_v13 = vld [vmem:[#allocation6 + $0xe0] sm:$0xff]  ;;  %v298_v14 = vld [vmem:[#allocation6 + $0xd8] sm:$0xff] }
  0x22   :  { %322 = vmatpush1.msra.mxu0 %v313_v4  ;;  %1464 = vmatpush1.msra.mxu1 %v313_v4  ;;  %v296_v15 = vld [vmem:[#allocation6 + $0xc8] sm:$0xff]  ;;  %v295_v16 = vld [vmem:[#allocation6 + $0xc0] sm:$0xff]  ;;  %v293_v17 = vld [vmem:[#allocation6 + $0xb0] sm:$0xff] }
  0x23   :  { %323 = vmatprep.subr.mxu0 %v311_v5  ;;  %1449 = vmatprep.subr.mxu1 %v311_v5  ;;  %v292_v18 = vld [vmem:[#allocation6 + $0xa8] sm:$0xff]  ;;  %v290_v19 = vld [vmem:[#allocation6 + $0x98] sm:$0xff]  ;;  %v289_v20 = vld [vmem:[#allocation6 + $0x90] sm:$0xff] }
  0x24   :  { %324 = vmatpush1.msra.mxu0 %v310_v6  ;;  %1465 = vmatpush1.msra.mxu1 %v310_v6  ;;  %v287_v21 = vld [vmem:[#allocation6 + $0x80] sm:$0xff]  ;;  %v286_v22 = vld [vmem:[#allocation6 + $0x78] sm:$0xff]  ;;  %v284_v23 = vld [vmem:[#allocation6 + $0x68] sm:$0xff] }
  0x25   :  { %325 = vmatprep.subr.mxu0 %v308_v7  ;;  %1450 = vmatprep.subr.mxu1 %v308_v7  ;;  %v283_v24 = vld [vmem:[#allocation6 + $0x60] sm:$0xff]  ;;  %v281_v25 = vld [vmem:[#allocation6 + $0x50] sm:$0xff]  ;;  %v280_v26 = vld [vmem:[#allocation6 + $0x48] sm:$0xff] }
  0x26   :  { %326 = vmatpush1.msra.mxu0 %v307_v8  ;;  %1466 = vmatpush1.msra.mxu1 %v307_v8  ;;  %v278_v27 = vld [vmem:[#allocation6 + $0x38] sm:$0xff]  ;;  %v277_v28 = vld [vmem:[#allocation6 + $0x30] sm:$0xff]  ;;  %v275_v29 = vld [vmem:[#allocation6 + $0x20] sm:$0xff] }
  0x27   :  { %327 = vmatprep.subr.mxu0 %v305_v9  ;;  %1451 = vmatprep.subr.mxu1 %v305_v9  ;;  %v274_v30 = vld [vmem:[#allocation6 + $0x18] sm:$0xff]  ;;  %v272_v31 = vld [vmem:[#allocation6 + $0x8] sm:$0xff]  ;;  %v271_v32 = vld [vmem:[#allocation6] sm:$0xff] }
  0x28   :  { %328 = vmatpush1.msra.mxu0 %v304_v10  ;;  %1467 = vmatpush1.msra.mxu1 %v304_v10  ;;  %v1592_v33 = vld [vmem:[#allocation3] sm:$0xff]  ;;  %v318_v35 = vld [vmem:[#allocation6 + $0x178] sm:$0xff]  ;;  %v1599_v37 = vld [vmem:[#allocation3 + $0x8] sm:$0xff] }
  0x29   :  { %329 = vmatprep.subr.mxu0 %v302_v11  ;;  %1452 = vmatprep.subr.mxu1 %v302_v11  ;;  %v1594_v34 = vld [vmem:[#allocation3 + $0xc0] sm:$0xff]  ;;  %v1602_v38 = vld [vmem:[#allocation3 + $0xc8] sm:$0xff]  ;;  %v309_v40 = vld [vmem:[#allocation6 + $0x130] sm:$0xff] }
  0x2a   :  { %330 = vmatpush1.msra.mxu0 %v301_v12  ;;  %1468 = vmatpush1.msra.mxu1 %v301_v12  ;;  %v315_v36 = vld [vmem:[#allocation6 + $0x160] sm:$0xff]  ;;  %v312_v39 = vld [vmem:[#allocation6 + $0x148] sm:$0xff]  ;;  %v1606_v41 = vld [vmem:[#allocation3 + $0x10] sm:$0xff] }
  0x2b   :  { %331 = vmatprep.subr.mxu0 %v299_v13  ;;  %1453 = vmatprep.subr.mxu1 %v299_v13  ;;  %v1609_v42 = vld [vmem:[#allocation3 + $0xd0] sm:$0xff]  ;;  %v306_v43 = vld [vmem:[#allocation6 + $0x118] sm:$0xff]  ;;  %v303_v44 = vld [vmem:[#allocation6 + $0x100] sm:$0xff] }
  0x2c   :  { %332 = vmatpush1.msra.mxu0 %v298_v14  ;;  %1469 = vmatpush1.msra.mxu1 %v298_v14  ;;  %v1614_v45 = vld [vmem:[#allocation3 + $0x18] sm:$0xff]  ;;  %v300_v47 = vld [vmem:[#allocation6 + $0xe8] sm:$0xff]  ;;  %v297_v48 = vld [vmem:[#allocation6 + $0xd0] sm:$0xff] }
  0x2d   :  { %333 = vmatprep.subr.mxu0 %v296_v15  ;;  %1454 = vmatprep.subr.mxu1 %v296_v15  ;;  %v1617_v46 = vld [vmem:[#allocation3 + $0xd8] sm:$0xff]  ;;  %v243_v49 = vld [vmem:[#allocation3 + $0x20] sm:$0xff]  ;;  %v244_v53 = vld [vmem:[#allocation3 + $0x28] sm:$0xff] }
  0x2e   :  { %334 = vmatpush1.msra.mxu0 %v295_v16  ;;  %1470 = vmatpush1.msra.mxu1 %v295_v16  ;;  %v1623_v50 = vld [vmem:[#allocation3 + $0xe0] sm:$0xff]  ;;  %v294_v51 = vld [vmem:[#allocation6 + $0xb8] sm:$0xff]  ;;  %v1628_v54 = vld [vmem:[#allocation3 + $0xe8] sm:$0xff] }
  0x2f   :  { %335 = vmatprep.subr.mxu0 %v293_v17  ;;  %1455 = vmatprep.subr.mxu1 %v293_v17  ;;  %v291_v52 = vld [vmem:[#allocation6 + $0xa0] sm:$0xff]  ;;  %v288_v55 = vld [vmem:[#allocation6 + $0x88] sm:$0xff]  ;;  %v285_v56 = vld [vmem:[#allocation6 + $0x70] sm:$0xff] }
  0x30   :  { %336 = vmatpush1.msra.mxu0 %v292_v18  ;;  %1471 = vmatpush1.msra.mxu1 %v292_v18  ;;  %v245_v57 = vld [vmem:[#allocation3 + $0x30] sm:$0xff]  ;;  %v282_v59 = vld [vmem:[#allocation6 + $0x58] sm:$0xff]  ;;  %v279_v60 = vld [vmem:[#allocation6 + $0x40] sm:$0xff]  ;;  %v1094_v18 = vlaneseq }
  0x31   :  { %337 = vmatprep.subr.mxu0 %v290_v19  ;;  %1456 = vmatprep.subr.mxu1 %v290_v19  ;;  %v1633_v58 = vld [vmem:[#allocation3 + $0xf0] sm:$0xff]  ;;  %v246_v61 = vld [vmem:[#allocation3 + $0x38] sm:$0xff]  ;;  %v276_v63 = vld [vmem:[#allocation6 + $0x28] sm:$0xff] }
  0x32   :  { %338 = vmatpush1.msra.mxu0 %v289_v20  ;;  %1472 = vmatpush1.msra.mxu1 %v289_v20  ;;  %v1638_v62 = vld [vmem:[#allocation3 + $0xf8] sm:$0xff]  ;;  %v273_v1 = vld [vmem:[#allocation6 + $0x10] sm:$0xff]  ;;  %v247_v2 = vld [vmem:[#allocation3 + $0x40] sm:$0xff]  ;;  %v1670_v19 = vshrl.u32 %v1094_v18, 7 }
  0x33   :  { %339 = vmatprep.subr.mxu0 %v287_v21  ;;  %1457 = vmatprep.subr.mxu1 %v287_v21  ;;  %v248_v3 = vld [vmem:[#allocation3 + $0x48] sm:$0xff]  ;;  %v249_v4 = vld [vmem:[#allocation3 + $0x50] sm:$0xff]  ;;  %v250_v5 = vld [vmem:[#allocation3 + $0x58] sm:$0xff] }
  0x34   :  { %340 = vmatpush1.msra.mxu0 %v286_v22  ;;  %1473 = vmatpush1.msra.mxu1 %v286_v22  ;;  %v251_v6 = vld [vmem:[#allocation3 + $0x60] sm:$0xff]  ;;  %v252_v7 = vld [vmem:[#allocation3 + $0x68] sm:$0xff]  ;;  %v253_v8 = vld [vmem:[#allocation3 + $0x70] sm:$0xff]  ;;  %v1096_v20 = vsub.s32 0, %v1670_v19  ;;  %v1100_v22 = vsub.s32 1, %v1670_v19 }
  0x35   :  { %341 = vmatprep.subr.mxu0 %v284_v23  ;;  %1458 = vmatprep.subr.mxu1 %v284_v23  ;;  %v254_v9 = vld [vmem:[#allocation3 + $0x78] sm:$0xff]  ;;  %v255_v10 = vld [vmem:[#allocation3 + $0x80] sm:$0xff]  ;;  %v256_v11 = vld [vmem:[#allocation3 + $0x88] sm:$0xff] }
  0x36   :  { %342 = vmatpush1.msra.mxu0 %v283_v24  ;;  %1474 = vmatpush1.msra.mxu1 %v283_v24  ;;  %v257_v12 = vld [vmem:[#allocation3 + $0x90] sm:$0xff]  ;;  %v258_v13 = vld [vmem:[#allocation3 + $0x98] sm:$0xff]  ;;  %v259_v14 = vld [vmem:[#allocation3 + $0xa0] sm:$0xff] }
  0x37   :  { %343 = vmatprep.subr.mxu0 %v281_v25  ;;  %1459 = vmatprep.subr.mxu1 %v281_v25  ;;  %v260_v15 = vld [vmem:[#allocation3 + $0xa8] sm:$0xff]  ;;  %v261_v16 = vld [vmem:[#allocation3 + $0xb0] sm:$0xff]  ;;  %v262_v17 = vld [vmem:[#allocation3 + $0xb8] sm:$0xff] }
  0x38   :  { %344 = vmatpush1.msra.mxu0 %v280_v26  ;;  %1475 = vmatpush1.msra.mxu1 %v280_v26  ;;  %v1676_v21 = vld [vmem:[%s1793_s2] sm:$0x7]  ;;  %s1560_s2 = smov [#allocation8]  }
  0x39   :  { %345 = vmatprep.subr.mxu0 %v278_v27  ;;  %1460 = vmatprep.subr.mxu1 %v278_v27  ;;  %v1680_v23 = vrot.slane %v1676_v21, %v1096_v20  ;;  %s1306_s26 = sshll.u32 %s1560_s2, 4  ;;  %s1307_s26 = int_to_ptr.vmem [resolvable:$true] %s1306_s26 }
  0x3a   :  { %346 = vmatpush1.msra.mxu0 %v277_v28  ;;  %1476 = vmatpush1.msra.mxu1 %v277_v28  ;;  %s1527_s27 = scalar_lea.vmem %s1307_s26, 12288  ;;  %p1532_p11 = scmp.lt.s32.totalorder %s1307_s26, %s1307_s26 }
  0x3b   :  { %347 = vmatprep.subr.mxu0 %v275_v29  ;;  %1461 = vmatprep.subr.mxu1 %v275_v29  ;;  %p1528_p10 = scmp.ne.s32.totalorder %s1307_s26, %s1527_s27  ;;  %p1533_p12 = scmp.lt.s32.totalorder %s1527_s27, %s1527_s27 }
  0x3c   :  { %348 = vmatpush1.msra.mxu0 %v274_v30  ;;  %1477 = vmatpush1.msra.mxu1 %v274_v30 }
  0x3d   :  { %349 = vmatprep.subr.mxu0 %v272_v31  ;;  %1462 = vmatprep.subr.mxu1 %v272_v31  ;;  %p1534_p13 = por %p1533_p12, %p1532_p11 }
  0x3e   :  { %350 = vmatpush1.msra.mxu0 %v271_v32  ;;  %1478 = vmatpush1.msra.mxu1 %v271_v32 }
  0x3f   :  { %384 = vmatmul.mubr.f32.vlgmr.msra.gmra.mxu0 %v1592_v33  ;;  %528 = vmatmul.mubr.f32.vlgmr.msra.gmra.mxu1 %v1594_v34  ;;  %p1535_p0 = pnand %p1534_p13, %p1528_p10 }
  0x40   :  { %1367 = vmatprep.subr.mxu1 %v318_v35  ;;  %389 = vmatprep.mubr.f32.mxu0 %v1559_v0 }
  0x41   :  { %1368 = vmatpush3.msra.mxu1 %v318_v35  ;;  %533 = vmatprep.mubr.f32.mxu1 %v1559_v0 }
  0x42   :  { %1369 = vmatprep.subr.mxu1 %v315_v36 }
  0x43   :  { %1370 = vmatpush3.msra.mxu1 %v315_v36  ;;  %390 = vmatmul.mubr.f32.gmra.mxu0 %v1599_v37 }
  0x44   :  { %534 = vmatmul.mubr.f32.gmra.mxu1 %v1602_v38  ;;  %1371 = vmatprep.subr.mxu1 %v312_v39 }
  0x45   :  { %1372 = vmatpush3.msra.mxu1 %v312_v39  ;;  %395 = vmatprep.mubr.f32.mxu0 %v1559_v0 }
  0x46   :  { %1373 = vmatprep.subr.mxu1 %v309_v40  ;;  %539 = vmatprep.mubr.f32.mxu1 %v1559_v0 }
  0x47   :  { %1374 = vmatpush3.msra.mxu1 %v309_v40  ;;  %396 = vmatmul.mubr.f32.gmra.mxu0 %v1606_v41 }
  0x48   :  { %540 = vmatmul.mubr.f32.gmra.mxu1 %v1609_v42  ;;  %1375 = vmatprep.subr.mxu1 %v306_v43 }
  0x49   :  { %1376 = vmatpush3.msra.mxu1 %v306_v43  ;;  %401 = vmatprep.mubr.f32.mxu0 %v1559_v0 }
  0x4a   :  { %1377 = vmatprep.subr.mxu1 %v303_v44  ;;  %545 = vmatprep.mubr.f32.mxu1 %v1559_v0 }
  0x4b   :  { %1378 = vmatpush3.msra.mxu1 %v303_v44  ;;  %402 = vmatmul.mubr.f32.gmra.mxu0 %v1614_v45 }
  0x4c   :  { %546 = vmatmul.mubr.f32.gmra.mxu1 %v1617_v46  ;;  %1379 = vmatprep.subr.mxu1 %v300_v47 }
  0x4d   :  { %1380 = vmatpush3.msra.mxu1 %v300_v47  ;;  %407 = vmatprep.mubr.f32.mxu0 %v1559_v0 }
  0x4e   :  { %1381 = vmatprep.subr.mxu1 %v297_v48  ;;  %551 = vmatprep.mubr.f32.mxu1 %v1559_v0 }
  0x4f   :  { %1382 = vmatpush3.msra.mxu1 %v297_v48  ;;  %408 = vmatmul.mubr.f32.gmra.mxu0 %v243_v49 }
  0x50   :  { %552 = vmatmul.mubr.f32.gmra.mxu1 %v1623_v50  ;;  %1383 = vmatprep.subr.mxu1 %v294_v51 }
  0x51   :  { %1384 = vmatpush3.msra.mxu1 %v294_v51  ;;  %413 = vmatprep.mubr.f32.mxu0 %v1559_v0 }
  0x52   :  { %1385 = vmatprep.subr.mxu1 %v291_v52  ;;  %557 = vmatprep.mubr.f32.mxu1 %v1559_v0 }
  0x53   :  { %1386 = vmatpush3.msra.mxu1 %v291_v52  ;;  %414 = vmatmul.mubr.f32.gmra.mxu0 %v244_v53 }
  0x54   :  { %558 = vmatmul.mubr.f32.gmra.mxu1 %v1628_v54  ;;  %1387 = vmatprep.subr.mxu1 %v288_v55 }
  0x55   :  { %1388 = vmatpush3.msra.mxu1 %v288_v55  ;;  %419 = vmatprep.mubr.f32.mxu0 %v1559_v0 }
  0x56   :  { %1389 = vmatprep.subr.mxu1 %v285_v56  ;;  %563 = vmatprep.mubr.f32.mxu1 %v1559_v0 }
  0x57   :  { %1390 = vmatpush3.msra.mxu1 %v285_v56  ;;  %420 = vmatmul.mubr.f32.gmra.mxu0 %v245_v57 }
  0x58   :  { %564 = vmatmul.mubr.f32.gmra.mxu1 %v1633_v58  ;;  %1391 = vmatprep.subr.mxu1 %v282_v59 }
  0x59   :  { %1392 = vmatpush3.msra.mxu1 %v282_v59  ;;  %425 = vmatprep.mubr.f32.mxu0 %v1559_v0 }
  0x5a   :  { %1393 = vmatprep.subr.mxu1 %v279_v60  ;;  %569 = vmatprep.mubr.f32.mxu1 %v1559_v0 }
  0x5b   :  { %1394 = vmatpush3.msra.mxu1 %v279_v60  ;;  %426 = vmatmul.mubr.f32.gmra.mxu0 %v246_v61 }
  0x5c   :  { %570 = vmatmul.mubr.f32.gmra.mxu1 %v1638_v62  ;;  %1395 = vmatprep.subr.mxu1 %v276_v63 }
  0x5d   :  { %1396 = vmatpush3.msra.mxu1 %v276_v63  ;;  %431 = vmatprep.mubr.f32.mxu0 %v1559_v0 }
  0x5e   :  { %1397 = vmatprep.subr.mxu1 %v273_v1  ;;  %1399 = vmatprep.mubr.f32.mxu1 %v1592_v33 }
  0x5f   :  { %1398 = vmatpush3.msra.mxu1 %v273_v1  ;;  %432 = vmatmul.mubr.f32.gmra.mxu0 %v247_v2 }
  0x60   :  { %1400 = vmatmul.mubr.f32.vlgmr.msra.gmra.mxu1 %v1599_v37  ;;  %437 = vmatprep.mubr.f32.mxu0 %v1559_v0 }
  0x61   :  { %1402 = vmatprep.mubr.f32.mxu1 %v1606_v41 }
  0x63   :  { %438 = vmatmul.mubr.f32.gmra.mxu0 %v248_v3 }
  0x64   :  { %1403 = vmatmul.mubr.f32.gmra.mxu1 %v1614_v45  ;;  %443 = vmatprep.mubr.f32.mxu0 %v1559_v0 }
  0x65   :  { %1405 = vmatprep.mubr.f32.mxu1 %v243_v49 }
  0x67   :  { %444 = vmatmul.mubr.f32.gmra.mxu0 %v249_v4 }
  0x68   :  { %1406 = vmatmul.mubr.f32.gmra.mxu1 %v244_v53  ;;  %449 = vmatprep.mubr.f32.mxu0 %v1559_v0 }
  0x69   :  { %1408 = vmatprep.mubr.f32.mxu1 %v245_v57 }
  0x6b   :  { %450 = vmatmul.mubr.f32.gmra.mxu0 %v250_v5 }
  0x6c   :  { %1409 = vmatmul.mubr.f32.gmra.mxu1 %v246_v61  ;;  %455 = vmatprep.mubr.f32.mxu0 %v1559_v0 }
  0x6d   :  { %1411 = vmatprep.mubr.f32.mxu1 %v247_v2 }
  0x6f   :  { %456 = vmatmul.mubr.f32.gmra.mxu0 %v251_v6 }
  0x70   :  { %1412 = vmatmul.mubr.f32.gmra.mxu1 %v248_v3  ;;  %461 = vmatprep.mubr.f32.mxu0 %v1559_v0 }
  0x71   :  { %1414 = vmatprep.mubr.f32.mxu1 %v249_v4 }
  0x73   :  { %462 = vmatmul.mubr.f32.gmra.mxu0 %v252_v7 }
  0x74   :  { %1415 = vmatmul.mubr.f32.gmra.mxu1 %v250_v5  ;;  %467 = vmatprep.mubr.f32.mxu0 %v1559_v0 }
  0x75   :  { %1417 = vmatprep.mubr.f32.mxu1 %v251_v6 }
  0x77   :  { %468 = vmatmul.mubr.f32.gmra.mxu0 %v253_v8 }
  0x78   :  { %1418 = vmatmul.mubr.f32.gmra.mxu1 %v252_v7  ;;  %473 = vmatprep.mubr.f32.mxu0 %v1559_v0 }
  0x79   :  { %1420 = vmatprep.mubr.f32.mxu1 %v253_v8 }
  0x7b   :  { %474 = vmatmul.mubr.f32.gmra.mxu0 %v254_v9 }
  0x7c   :  { %1421 = vmatmul.mubr.f32.gmra.mxu1 %v254_v9  ;;  %479 = vmatprep.mubr.f32.mxu0 %v1559_v0 }
  0x7d   :  { %1423 = vmatprep.mubr.f32.mxu1 %v255_v10 }
  0x7f   :  { %480 = vmatmul.mubr.f32.gmra.mxu0 %v255_v10 }
  0x80   :  { %1424 = vmatmul.mubr.f32.gmra.mxu1 %v256_v11  ;;  %485 = vmatprep.mubr.f32.mxu0 %v1559_v0 }
  0x81   :  { %1426 = vmatprep.mubr.f32.mxu1 %v257_v12 }
  0x83   :  { %486 = vmatmul.mubr.f32.gmra.mxu0 %v256_v11 }
  0x84   :  { %1427 = vmatmul.mubr.f32.gmra.mxu1 %v258_v13  ;;  %491 = vmatprep.mubr.f32.mxu0 %v1559_v0 }
  0x85   :  { %1429 = vmatprep.mubr.f32.mxu1 %v259_v14 }
  0x87   :  { %492 = vmatmul.mubr.f32.gmra.mxu0 %v257_v12 }
  0x88   :  { %1430 = vmatmul.mubr.f32.gmra.mxu1 %v260_v15  ;;  %497 = vmatprep.mubr.f32.mxu0 %v1559_v0 }
  0x89   :  { %1432 = vmatprep.mubr.f32.mxu1 %v261_v16 }
  0x8b   :  { %498 = vmatmul.mubr.f32.gmra.mxu0 %v258_v13 }
  0x8c   :  { %1433 = vmatmul.mubr.f32.gmra.mxu1 %v262_v17  ;;  %503 = vmatprep.mubr.f32.mxu0 %v1559_v0 }
  0x8d   :  { %1435 = vmatprep.mubr.f32.mxu1 %v1594_v34 }
  0x8f   :  { %504 = vmatmul.mubr.f32.gmra.mxu0 %v259_v14  ;;  %v1104_v14 = vsub.s32 2, %v1670_v19 }
  0x90   :  { %1436 = vmatmul.mubr.f32.gmra.mxu1 %v1602_v38  ;;  %509 = vmatprep.mubr.f32.mxu0 %v1559_v0 }
  0x91   :  { %1438 = vmatprep.mubr.f32.mxu1 %v1609_v42 }
  0x93   :  { %510 = vmatmul.mubr.f32.gmra.mxu0 %v260_v15 }
  0x94   :  { %1439 = vmatmul.mubr.f32.gmra.mxu1 %v1617_v46  ;;  %515 = vmatprep.mubr.f32.mxu0 %v1559_v0 }
  0x95   :  { %1441 = vmatprep.mubr.f32.mxu1 %v1623_v50 }
  0x97   :  { %516 = vmatmul.mubr.f32.gmra.mxu0 %v261_v16 }
  0x98   :  { %1442 = vmatmul.mubr.f32.gmra.mxu1 %v1628_v54  ;;  %521 = vmatprep.mubr.f32.mxu0 %v1559_v0  ;;  %v1683_v0 = vrot.slane %v1676_v21, %v1100_v22 }
  0x99   :  { %1444 = vmatprep.mubr.f32.mxu1 %v1633_v58 }
  0x9b   :  { %522 = vmatmul.mubr.f32.gmra.mxu0 %v262_v17 }
  0x9c   :  { %1445 = vmatmul.mubr.f32.gmra.mxu1 %v1638_v62 }
  0xff   :  { %v385_v24 = vpop.f32.mrf.mxu0  ;;  %v529_v25 = vpop.f32.mrf.mxu1 }
 0x100   :  { %v1109_v26 = vadd.f32 %v1680_v23, %v385_v24  ;;  %v1181_v27 = vadd.f32 %v1680_v23, %v529_v25 }
 0x101   :  { %v387_v28 = vpop.f32.mrf.mxu0  ;;  %v531_v29 = vpop.f32.mrf.mxu1 }
 0x102   :  { %1205 = vst [vmem:[#allocation8] sm:$0xff] %v1109_v26  ;;  %1277 = vst [vmem:[#allocation8 + $0x240] sm:$0xff] %v1181_v27  ;;  %v1110_v30 = vadd.f32 %v1683_v0, %v387_v28  ;;  %v1182_v31 = vadd.f32 %v1683_v0, %v531_v29  ;;  %v1717_v26 = vrot.slane %v1676_v21, %v1104_v14 }
 0x103   :  { %v391_v32 = vpop.f32.mrf.mxu0 }
 0x104   :  { %1206 = vst [vmem:[#allocation8 + $0x8] sm:$0xff] %v1110_v30  ;;  %1278 = vst [vmem:[#allocation8 + $0x248] sm:$0xff] %v1182_v31  ;;  %v1112_v33 = vadd.f32 %v1680_v23, %v391_v32  ;;  %v535_v34 = vpop.f32.mrf.mxu1 }
 0x105   :  { %v1184_v35 = vadd.f32 %v1680_v23, %v535_v34  ;;  %v393_v36 = vpop.f32.mrf.mxu0 }
 0x106   :  { %1208 = vst [vmem:[#allocation8 + $0x18] sm:$0xff] %v1112_v33  ;;  %v1113_v37 = vadd.f32 %v1683_v0, %v393_v36  ;;  %v537_v38 = vpop.f32.mrf.mxu1 }
 0x107   :  { %1280 = vst [vmem:[#allocation8 + $0x258] sm:$0xff] %v1184_v35  ;;  %v1185_v39 = vadd.f32 %v1683_v0, %v537_v38  ;;  %v397_v40 = vpop.f32.mrf.mxu0 }
 0x108   :  { %1209 = vst [vmem:[#allocation8 + $0x20] sm:$0xff] %v1113_v37  ;;  %v1115_v41 = vadd.f32 %v1680_v23, %v397_v40  ;;  %v541_v42 = vpop.f32.mrf.mxu1 }
 0x109   :  { %1281 = vst [vmem:[#allocation8 + $0x260] sm:$0xff] %v1185_v39  ;;  %v1187_v43 = vadd.f32 %v1680_v23, %v541_v42  ;;  %v399_v44 = vpop.f32.mrf.mxu0 }
 0x10a   :  { %1211 = vst [vmem:[#allocation8 + $0x30] sm:$0xff] %v1115_v41  ;;  %v1116_v45 = vadd.f32 %v1683_v0, %v399_v44  ;;  %v543_v46 = vpop.f32.mrf.mxu1 }
 0x10b   :  { %1283 = vst [vmem:[#allocation8 + $0x270] sm:$0xff] %v1187_v43  ;;  %v1188_v47 = vadd.f32 %v1683_v0, %v543_v46  ;;  %v403_v48 = vpop.f32.mrf.mxu0 }
 0x10c   :  { %1212 = vst [vmem:[#allocation8 + $0x38] sm:$0xff] %v1116_v45  ;;  %v1118_v49 = vadd.f32 %v1680_v23, %v403_v48  ;;  %v547_v50 = vpop.f32.mrf.mxu1 }
 0x10d   :  { %1284 = vst [vmem:[#allocation8 + $0x278] sm:$0xff] %v1188_v47  ;;  %v1190_v51 = vadd.f32 %v1680_v23, %v547_v50  ;;  %v405_v52 = vpop.f32.mrf.mxu0 }
 0x10e   :  { %1214 = vst [vmem:[#allocation8 + $0x48] sm:$0xff] %v1118_v49  ;;  %v1119_v53 = vadd.f32 %v1683_v0, %v405_v52  ;;  %v549_v54 = vpop.f32.mrf.mxu1 }
 0x10f   :  { %1286 = vst [vmem:[#allocation8 + $0x288] sm:$0xff] %v1190_v51  ;;  %v1191_v55 = vadd.f32 %v1683_v0, %v549_v54  ;;  %v409_v56 = vpop.f32.mrf.mxu0 }
 0x110   :  { %1215 = vst [vmem:[#allocation8 + $0x50] sm:$0xff] %v1119_v53  ;;  %v1121_v57 = vadd.f32 %v1680_v23, %v409_v56  ;;  %v553_v58 = vpop.f32.mrf.mxu1 }
 0x111   :  { %1287 = vst [vmem:[#allocation8 + $0x290] sm:$0xff] %v1191_v55  ;;  %v1193_v59 = vadd.f32 %v1680_v23, %v553_v58  ;;  %v411_v60 = vpop.f32.mrf.mxu0 }
 0x112   :  { %1217 = vst [vmem:[#allocation8 + $0x60] sm:$0xff] %v1121_v57  ;;  %v1122_v61 = vadd.f32 %v1683_v0, %v411_v60  ;;  %v555_v62 = vpop.f32.mrf.mxu1 }
 0x113   :  { %1289 = vst [vmem:[#allocation8 + $0x2a0] sm:$0xff] %v1193_v59  ;;  %v1194_v63 = vadd.f32 %v1683_v0, %v555_v62  ;;  %v415_v1 = vpop.f32.mrf.mxu0 }
 0x114   :  { %1218 = vst [vmem:[#allocation8 + $0x68] sm:$0xff] %v1122_v61  ;;  %v1124_v2 = vadd.f32 %v1680_v23, %v415_v1  ;;  %v559_v3 = vpop.f32.mrf.mxu1 }
 0x115   :  { %1290 = vst [vmem:[#allocation8 + $0x2a8] sm:$0xff] %v1194_v63  ;;  %v1196_v4 = vadd.f32 %v1680_v23, %v559_v3  ;;  %v417_v5 = vpop.f32.mrf.mxu0 }
 0x116   :  { %1220 = vst [vmem:[#allocation8 + $0x78] sm:$0xff] %v1124_v2  ;;  %v1125_v6 = vadd.f32 %v1683_v0, %v417_v5  ;;  %v561_v7 = vpop.f32.mrf.mxu1 }
 0x117   :  { %1292 = vst [vmem:[#allocation8 + $0x2b8] sm:$0xff] %v1196_v4  ;;  %v1197_v8 = vadd.f32 %v1683_v0, %v561_v7  ;;  %v421_v9 = vpop.f32.mrf.mxu0 }
 0x118   :  { %1221 = vst [vmem:[#allocation8 + $0x80] sm:$0xff] %v1125_v6  ;;  %v1127_v10 = vadd.f32 %v1680_v23, %v421_v9  ;;  %v565_v11 = vpop.f32.mrf.mxu1 }
 0x119   :  { %1293 = vst [vmem:[#allocation8 + $0x2c0] sm:$0xff] %v1197_v8  ;;  %v1199_v12 = vadd.f32 %v1680_v23, %v565_v11  ;;  %v423_v13 = vpop.f32.mrf.mxu0 }
 0x11a   :  { %1223 = vst [vmem:[#allocation8 + $0x90] sm:$0xff] %v1127_v10  ;;  %v1128_v15 = vadd.f32 %v1683_v0, %v423_v13  ;;  %v567_v16 = vpop.f32.mrf.mxu1 }
 0x11b   :  { %1295 = vst [vmem:[#allocation8 + $0x2d0] sm:$0xff] %v1199_v12  ;;  %v1200_v17 = vadd.f32 %v1683_v0, %v567_v16  ;;  %v427_v18 = vpop.f32.mrf.mxu0 }
 0x11c   :  { %1224 = vst [vmem:[#allocation8 + $0x98] sm:$0xff] %v1128_v15  ;;  %v1130_v20 = vadd.f32 %v1680_v23, %v427_v18  ;;  %v571_v22 = vpop.f32.mrf.mxu1 }
 0x11d   :  { %1296 = vst [vmem:[#allocation8 + $0x2d8] sm:$0xff] %v1200_v17  ;;  %v1202_v24 = vadd.f32 %v1680_v23, %v571_v22  ;;  %v429_v25 = vpop.f32.mrf.mxu0 }
 0x11e   :  { %1226 = vst [vmem:[#allocation8 + $0xa8] sm:$0xff] %v1130_v20  ;;  %v1131_v19 = vadd.f32 %v1683_v0, %v429_v25  ;;  %v573_v27 = vpop.f32.mrf.mxu1 }
 0x11f   :  { %1298 = vst [vmem:[#allocation8 + $0x2e8] sm:$0xff] %v1202_v24  ;;  %v1203_v28 = vadd.f32 %v1683_v0, %v573_v27  ;;  %v433_v29 = vpop.f32.mrf.mxu0 }
 0x120   :  { %1227 = vst [vmem:[#allocation8 + $0xb0] sm:$0xff] %v1131_v19  ;;  %v1133_v30 = vadd.f32 %v1680_v23, %v433_v29  ;;  %v1401_v31 = vpop.f32.mrf.mxu1 }
 0x121   :  { %1299 = vst [vmem:[#allocation8 + $0x2f0] sm:$0xff] %v1203_v28  ;;  %v1114_v32 = vadd.f32 %v1401_v31, %v1717_v26  ;;  %v435_v33 = vpop.f32.mrf.mxu0 }
 0x122   :  { %1229 = vst [vmem:[#allocation8 + $0xc0] sm:$0xff] %v1133_v30  ;;  %v1134_v21 = vadd.f32 %v1683_v0, %v435_v33  ;;  %v642_v34 = vpop.f32.mrf.mxu1 }
 0x123   :  { %1210 = vst [vmem:[#allocation8 + $0x28] sm:$0xff] %v1114_v32  ;;  %v1111_v35 = vadd.f32 %v1717_v26, %v642_v34  ;;  %v439_v36 = vpop.f32.mrf.mxu0 }
 0x124   :  { %1230 = vst [vmem:[#allocation8 + $0xc8] sm:$0xff] %v1134_v21  ;;  %v1136_v37 = vadd.f32 %v1680_v23, %v439_v36  ;;  %v1404_v38 = vpop.f32.mrf.mxu1 }
 0x125   :  { %1207 = vst [vmem:[#allocation8 + $0x10] sm:$0xff] %v1111_v35  ;;  %v1120_v39 = vadd.f32 %v1404_v38, %v1717_v26  ;;  %v441_v40 = vpop.f32.mrf.mxu0 }
 0x126   :  { %1232 = vst [vmem:[#allocation8 + $0xd8] sm:$0xff] %v1136_v37  ;;  %v1137_v41 = vadd.f32 %v1683_v0, %v441_v40  ;;  %v652_v42 = vpop.f32.mrf.mxu1 }
 0x127   :  { %1216 = vst [vmem:[#allocation8 + $0x58] sm:$0xff] %v1120_v39  ;;  %v1117_v43 = vadd.f32 %v1717_v26, %v652_v42  ;;  %v445_v44 = vpop.f32.mrf.mxu0 }
 0x128   :  { %1233 = vst [vmem:[#allocation8 + $0xe0] sm:$0xff] %v1137_v41  ;;  %v1139_v45 = vadd.f32 %v1680_v23, %v445_v44  ;;  %v1407_v46 = vpop.f32.mrf.mxu1 }
 0x129   :  { %1213 = vst [vmem:[#allocation8 + $0x40] sm:$0xff] %v1117_v43  ;;  %v1126_v47 = vadd.f32 %v1407_v46, %v1717_v26  ;;  %v447_v48 = vpop.f32.mrf.mxu0 }
 0x12a   :  { %1235 = vst [vmem:[#allocation8 + $0xf0] sm:$0xff] %v1139_v45  ;;  %v1140_v49 = vadd.f32 %v1683_v0, %v447_v48  ;;  %v662_v50 = vpop.f32.mrf.mxu1 }
 0x12b   :  { %1222 = vst [vmem:[#allocation8 + $0x88] sm:$0xff] %v1126_v47  ;;  %v1123_v51 = vadd.f32 %v1717_v26, %v662_v50  ;;  %v451_v52 = vpop.f32.mrf.mxu0 }
 0x12c   :  { %1236 = vst [vmem:[#allocation8 + $0xf8] sm:$0xff] %v1140_v49  ;;  %v1142_v53 = vadd.f32 %v1680_v23, %v451_v52  ;;  %v1410_v54 = vpop.f32.mrf.mxu1 }
 0x12d   :  { %1219 = vst [vmem:[#allocation8 + $0x70] sm:$0xff] %v1123_v51  ;;  %v1132_v55 = vadd.f32 %v1410_v54, %v1717_v26  ;;  %v453_v56 = vpop.f32.mrf.mxu0 }
 0x12e   :  { %1238 = vst [vmem:[#allocation8 + $0x108] sm:$0xff] %v1142_v53  ;;  %v1143_v57 = vadd.f32 %v1683_v0, %v453_v56  ;;  %v672_v58 = vpop.f32.mrf.mxu1 }
 0x12f   :  { %1228 = vst [vmem:[#allocation8 + $0xb8] sm:$0xff] %v1132_v55  ;;  %v1129_v59 = vadd.f32 %v1717_v26, %v672_v58  ;;  %v457_v60 = vpop.f32.mrf.mxu0 }
 0x130   :  { %1239 = vst [vmem:[#allocation8 + $0x110] sm:$0xff] %v1143_v57  ;;  %v1145_v61 = vadd.f32 %v1680_v23, %v457_v60  ;;  %v1413_v62 = vpop.f32.mrf.mxu1 }
 0x131   :  { %1225 = vst [vmem:[#allocation8 + $0xa0] sm:$0xff] %v1129_v59  ;;  %v1138_v63 = vadd.f32 %v1413_v62, %v1717_v26  ;;  %v459_v1 = vpop.f32.mrf.mxu0 }
 0x132   :  { %1241 = vst [vmem:[#allocation8 + $0x120] sm:$0xff] %v1145_v61  ;;  %v1146_v2 = vadd.f32 %v1683_v0, %v459_v1  ;;  %v682_v3 = vpop.f32.mrf.mxu1 }
 0x133   :  { %1234 = vst [vmem:[#allocation8 + $0xe8] sm:$0xff] %v1138_v63  ;;  %v1135_v4 = vadd.f32 %v1717_v26, %v682_v3  ;;  %v463_v5 = vpop.f32.mrf.mxu0 }
 0x134   :  { %1242 = vst [vmem:[#allocation8 + $0x128] sm:$0xff] %v1146_v2  ;;  %v1148_v6 = vadd.f32 %v1680_v23, %v463_v5  ;;  %v1416_v7 = vpop.f32.mrf.mxu1 }
 0x135   :  { %1231 = vst [vmem:[#allocation8 + $0xd0] sm:$0xff] %v1135_v4  ;;  %v1144_v8 = vadd.f32 %v1416_v7, %v1717_v26  ;;  %v465_v9 = vpop.f32.mrf.mxu0 }
 0x136   :  { %1244 = vst [vmem:[#allocation8 + $0x138] sm:$0xff] %v1148_v6  ;;  %v1149_v10 = vadd.f32 %v1683_v0, %v465_v9  ;;  %v692_v11 = vpop.f32.mrf.mxu1 }
 0x137   :  { %1240 = vst [vmem:[#allocation8 + $0x118] sm:$0xff] %v1144_v8  ;;  %v1141_v12 = vadd.f32 %v1717_v26, %v692_v11  ;;  %v469_v13 = vpop.f32.mrf.mxu0 }
 0x138   :  { %1245 = vst [vmem:[#allocation8 + $0x140] sm:$0xff] %v1149_v10  ;;  %v1151_v14 = vadd.f32 %v1680_v23, %v469_v13  ;;  %v1419_v15 = vpop.f32.mrf.mxu1 }
 0x139   :  { %1237 = vst [vmem:[#allocation8 + $0x100] sm:$0xff] %v1141_v12  ;;  %v1150_v16 = vadd.f32 %v1419_v15, %v1717_v26  ;;  %v471_v17 = vpop.f32.mrf.mxu0 }
 0x13a   :  { %1247 = vst [vmem:[#allocation8 + $0x150] sm:$0xff] %v1151_v14  ;;  %v1152_v18 = vadd.f32 %v1683_v0, %v471_v17  ;;  %v702_v20 = vpop.f32.mrf.mxu1 }
 0x13b   :  { %1246 = vst [vmem:[#allocation8 + $0x148] sm:$0xff] %v1150_v16  ;;  %v1147_v22 = vadd.f32 %v1717_v26, %v702_v20  ;;  %v475_v24 = vpop.f32.mrf.mxu0 }
 0x13c   :  { %1248 = vst [vmem:[#allocation8 + $0x158] sm:$0xff] %v1152_v18  ;;  %v1154_v25 = vadd.f32 %v1680_v23, %v475_v24  ;;  %v1422_v19 = vpop.f32.mrf.mxu1 }
 0x13d   :  { %1243 = vst [vmem:[#allocation8 + $0x130] sm:$0xff] %v1147_v22  ;;  %v1156_v27 = vadd.f32 %v1422_v19, %v1717_v26  ;;  %v477_v28 = vpop.f32.mrf.mxu0 }
 0x13e   :  { %1250 = vst [vmem:[#allocation8 + $0x168] sm:$0xff] %v1154_v25  ;;  %v1155_v29 = vadd.f32 %v1683_v0, %v477_v28  ;;  %v712_v30 = vpop.f32.mrf.mxu1 }
 0x13f   :  { %1252 = vst [vmem:[#allocation8 + $0x178] sm:$0xff] %v1156_v27  ;;  %v1153_v31 = vadd.f32 %v1717_v26, %v712_v30  ;;  %v481_v32 = vpop.f32.mrf.mxu0 }
 0x140   :  { %1251 = vst [vmem:[#allocation8 + $0x170] sm:$0xff] %v1155_v29  ;;  %v1157_v33 = vadd.f32 %v1680_v23, %v481_v32  ;;  %v1425_v21 = vpop.f32.mrf.mxu1 }
 0x141   :  { %1249 = vst [vmem:[#allocation8 + $0x160] sm:$0xff] %v1153_v31  ;;  %v1162_v34 = vadd.f32 %v1425_v21, %v1717_v26  ;;  %v483_v35 = vpop.f32.mrf.mxu0 }
 0x142   :  { %1253 = vst [vmem:[#allocation8 + $0x180] sm:$0xff] %v1157_v33  ;;  %v1158_v36 = vadd.f32 %v1683_v0, %v483_v35  ;;  %v722_v37 = vpop.f32.mrf.mxu1 }
 0x143   :  { %1258 = vst [vmem:[#allocation8 + $0x1a8] sm:$0xff] %v1162_v34  ;;  %v1159_v38 = vadd.f32 %v1717_v26, %v722_v37  ;;  %v487_v39 = vpop.f32.mrf.mxu0 }
 0x144   :  { %1254 = vst [vmem:[#allocation8 + $0x188] sm:$0xff] %v1158_v36  ;;  %v1160_v40 = vadd.f32 %v1680_v23, %v487_v39  ;;  %v1428_v41 = vpop.f32.mrf.mxu1 }
 0x145   :  { %1255 = vst [vmem:[#allocation8 + $0x190] sm:$0xff] %v1159_v38  ;;  %v1168_v42 = vadd.f32 %v1428_v41, %v1717_v26  ;;  %v489_v43 = vpop.f32.mrf.mxu0 }
 0x146   :  { %1256 = vst [vmem:[#allocation8 + $0x198] sm:$0xff] %v1160_v40  ;;  %v1161_v44 = vadd.f32 %v1683_v0, %v489_v43  ;;  %v732_v45 = vpop.f32.mrf.mxu1 }
 0x147   :  { %1264 = vst [vmem:[#allocation8 + $0x1d8] sm:$0xff] %v1168_v42  ;;  %v1165_v46 = vadd.f32 %v1717_v26, %v732_v45  ;;  %v493_v47 = vpop.f32.mrf.mxu0 }
 0x148   :  { %1257 = vst [vmem:[#allocation8 + $0x1a0] sm:$0xff] %v1161_v44  ;;  %v1163_v48 = vadd.f32 %v1680_v23, %v493_v47  ;;  %v1431_v49 = vpop.f32.mrf.mxu1 }
 0x149   :  { %1261 = vst [vmem:[#allocation8 + $0x1c0] sm:$0xff] %v1165_v46  ;;  %v1174_v50 = vadd.f32 %v1431_v49, %v1717_v26  ;;  %v495_v51 = vpop.f32.mrf.mxu0 }
 0x14a   :  { %1259 = vst [vmem:[#allocation8 + $0x1b0] sm:$0xff] %v1163_v48  ;;  %v1164_v52 = vadd.f32 %v1683_v0, %v495_v51  ;;  %v742_v53 = vpop.f32.mrf.mxu1 }
 0x14b   :  { %1270 = vst [vmem:[#allocation8 + $0x208] sm:$0xff] %v1174_v50  ;;  %v1171_v54 = vadd.f32 %v1717_v26, %v742_v53  ;;  %v499_v55 = vpop.f32.mrf.mxu0 }
 0x14c   :  { %1260 = vst [vmem:[#allocation8 + $0x1b8] sm:$0xff] %v1164_v52  ;;  %v1166_v56 = vadd.f32 %v1680_v23, %v499_v55  ;;  %v1434_v57 = vpop.f32.mrf.mxu1 }
 0x14d   :  { %1267 = vst [vmem:[#allocation8 + $0x1f0] sm:$0xff] %v1171_v54  ;;  %v1180_v58 = vadd.f32 %v1434_v57, %v1717_v26  ;;  %v501_v59 = vpop.f32.mrf.mxu0 }
 0x14e   :  { %1262 = vst [vmem:[#allocation8 + $0x1c8] sm:$0xff] %v1166_v56  ;;  %v1167_v60 = vadd.f32 %v1683_v0, %v501_v59  ;;  %v752_v61 = vpop.f32.mrf.mxu1 }
 0x14f   :  { %1276 = vst [vmem:[#allocation8 + $0x238] sm:$0xff] %v1180_v58  ;;  %v1177_v62 = vadd.f32 %v1717_v26, %v752_v61  ;;  %v505_v63 = vpop.f32.mrf.mxu0 }
 0x150   :  { %1263 = vst [vmem:[#allocation8 + $0x1d0] sm:$0xff] %v1167_v60  ;;  %v1169_v1 = vadd.f32 %v1680_v23, %v505_v63  ;;  %v1437_v2 = vpop.f32.mrf.mxu1 }
 0x151   :  { %1273 = vst [vmem:[#allocation8 + $0x220] sm:$0xff] %v1177_v62  ;;  %v1186_v3 = vadd.f32 %v1437_v2, %v1717_v26  ;;  %v507_v4 = vpop.f32.mrf.mxu0 }
 0x152   :  { %1265 = vst [vmem:[#allocation8 + $0x1e0] sm:$0xff] %v1169_v1  ;;  %v1170_v5 = vadd.f32 %v1683_v0, %v507_v4  ;;  %v762_v6 = vpop.f32.mrf.mxu1 }
 0x153   :  { %1282 = vst [vmem:[#allocation8 + $0x268] sm:$0xff] %v1186_v3  ;;  %v1183_v7 = vadd.f32 %v1717_v26, %v762_v6  ;;  %v511_v8 = vpop.f32.mrf.mxu0 }
 0x154   :  { %1266 = vst [vmem:[#allocation8 + $0x1e8] sm:$0xff] %v1170_v5  ;;  %v1172_v9 = vadd.f32 %v1680_v23, %v511_v8  ;;  %v1440_v10 = vpop.f32.mrf.mxu1 }
 0x155   :  { %1279 = vst [vmem:[#allocation8 + $0x250] sm:$0xff] %v1183_v7  ;;  %v1192_v11 = vadd.f32 %v1440_v10, %v1717_v26  ;;  %v513_v12 = vpop.f32.mrf.mxu0 }
 0x156   :  { %1268 = vst [vmem:[#allocation8 + $0x1f8] sm:$0xff] %v1172_v9  ;;  %v1173_v13 = vadd.f32 %v1683_v0, %v513_v12  ;;  %v772_v14 = vpop.f32.mrf.mxu1 }
 0x157   :  { %1288 = vst [vmem:[#allocation8 + $0x298] sm:$0xff] %v1192_v11  ;;  %v1189_v15 = vadd.f32 %v1717_v26, %v772_v14  ;;  %v517_v16 = vpop.f32.mrf.mxu0 }
 0x158   :  { %1269 = vst [vmem:[#allocation8 + $0x200] sm:$0xff] %v1173_v13  ;;  %v1175_v17 = vadd.f32 %v1680_v23, %v517_v16  ;;  %v1443_v18 = vpop.f32.mrf.mxu1 }
 0x159   :  { %1285 = vst [vmem:[#allocation8 + $0x280] sm:$0xff] %v1189_v15  ;;  %v1198_v20 = vadd.f32 %v1443_v18, %v1717_v26  ;;  %v519_v22 = vpop.f32.mrf.mxu0 }
 0x15a   :  { %1271 = vst [vmem:[#allocation8 + $0x210] sm:$0xff] %v1175_v17  ;;  %v1176_v24 = vadd.f32 %v1683_v0, %v519_v22  ;;  %v782_v25 = vpop.f32.mrf.mxu1 }
 0x15b   :  { %1294 = vst [vmem:[#allocation8 + $0x2c8] sm:$0xff] %v1198_v20  ;;  %v1195_v19 = vadd.f32 %v1717_v26, %v782_v25  ;;  %v523_v27 = vpop.f32.mrf.mxu0 }
 0x15c   :  { %1272 = vst [vmem:[#allocation8 + $0x218] sm:$0xff] %v1176_v24  ;;  %v1178_v28 = vadd.f32 %v1680_v23, %v523_v27  ;;  %v1446_v29 = vpop.f32.mrf.mxu1 }
 0x15d   :  { %1291 = vst [vmem:[#allocation8 + $0x2b0] sm:$0xff] %v1195_v19  ;;  %v1204_v30 = vadd.f32 %v1446_v29, %v1717_v26  ;;  %v525_v31 = vpop.f32.mrf.mxu0 }
 0x15e   :  { %1274 = vst [vmem:[#allocation8 + $0x228] sm:$0xff] %v1178_v28  ;;  %v1179_v32 = vadd.f32 %v1683_v0, %v525_v31  ;;  %v792_v33 = vpop.f32.mrf.mxu1 }
 0x15f   :  { %1300 = vst [vmem:[#allocation8 + $0x2f8] sm:$0xff] %v1204_v30  ;;  %v1201_v21 = vadd.f32 %v1717_v26, %v792_v33 }
 0x160   :  { %1275 = vst [vmem:[#allocation8 + $0x230] sm:$0xff] %v1179_v32 }
 0x161   :  { %1297 = vst [vmem:[#allocation8 + $0x2e0] sm:$0xff] %v1201_v21 }
 0x162   :  { %1538 = shalt.err (!%p1535_p0)
}
 0x163   :  { %1312 = dma.vmem_to_hbm [thread:$0]  %s1307_s26, 12288, %s1794_s3, [#allocation5], %s1557_s22, %s1557_s22, %s1558_s23  }
 0x164   :  { %1551 = dma.done.wait [#allocation5], 12288  }
 0x165   :  { %1552 = vsyncadd [#allocation5], 4294955008 }
 0x166   :  { %1316 = vsyncpa [#allocation4], 1 }
 0x167   :  { %1317 = vsyncpa [#allocation7], 1 }
 0x168   :  { %1318 = vsyncpa [#allocation5], 1 }

</bundles_post_ra>
